<compile_context>
chip_gen: v7x
topology: tpu7x:2x2x1
jax: 0.10.0
libtpu: 0.0.40
codegen_flags: <defaults>
</compile_context>

<pallas_src>
import math
import functools

import numpy as np
import jax
import jax.numpy as jnp
from jax.experimental import pallas as pl
from jax.experimental.pallas import tpu as pltpu


def _round_up(x, m):
    return ((x + m - 1) // m) * m


def _sincconv_kernel(w_ref, x_ref, o_ref, *, kf, l_tile):
    """One (batch, L-tile) grid step: im2col + one MXU matmul.

    w_ref: (64, kf*c_in)     folded conv weight (sinc filters folded into 1x1)
    x_ref: (c_in, L_in_pad)  full zero-padded row for this batch element
                             (VMEM-resident across the L-tile grid axis)
    o_ref: (64, l_tile)      lane-dense (multiple-of-128) output tile
    """
    tile = pl.program_id(1)
    start = pl.multiple_of(tile * l_tile, 128)          # 128-aligned dynamic start
    # One aligned dynamic slice covering the tile plus its (kf-1) halo, then
    # static lane-shifted views build the im2col slab (rows ordered k-outer,
    # in-channel-inner, matching w_ref).  All multiply-accumulate work goes to
    # the MXU; the lane shifts are cheap XLU work that co-issues with it.
    xt = x_ref[:, pl.ds(start, l_tile + kf - 1)]        # (c_in, l_tile + kf - 1)
    xcol = jnp.concatenate([xt[:, k:k + l_tile] for k in range(kf)], axis=0)
    # f32 accumulation on the MXU; cast only at the (possibly bf16) store.
    o_ref[...] = jnp.dot(w_ref[...], xcol,
                         preferred_element_type=jnp.float32).astype(o_ref.dtype)


def sincconv_multiple_channel(waveforms, a_, b_, w_1x1, kernel_size, *,
                              l_tile=8192,
                              compute_dtype=jnp.bfloat16,
                              out_dtype=jnp.bfloat16):
    """Pallas equivalent of SincConv_multiple_channel.forward."""
    N, c_in, L = waveforms.shape
    out_ch = a_.shape[0]
    c64 = w_1x1.shape[0]

    K = kernel_size + 1 if kernel_size % 2 == 0 else kernel_size   # __init__ adjust
    half = K // 2
    kf = 2 * K + 1                                                 # sinc() length
    L_out = L + 2 * half - kf + 1                                  # = L - K - 1
    assert L_out > 0, "input too short for this kernel_size"

    # ---- sinc filter synthesis + exact fold into the 1x1 weight (tiny,
    # parameter-only, batch-invariant -> plain JAX in the wrapper, runs once). ----
    time_disc = jnp.linspace(-half, half, K).astype(jnp.float32)   # (K,)
    a2 = a_.reshape(out_ch, 1).astype(jnp.float32)
    b2 = b_.reshape(out_ch, 1).astype(jnp.float32)
    arg = 2.0 * math.pi * a2 * (time_disc[None, :] - b2)           # (out_ch, K)
    y_right = jnp.sin(arg) / (arg + 1e-6)                          # faithful to torch src
    filt = jnp.concatenate(
        [jnp.flip(y_right, axis=1), jnp.ones((out_ch, 1), jnp.float32), y_right],
        axis=1)                                                    # (out_ch, kf)

    # torch.cat channel order is (in-channel outer, out-channel inner).
    w3 = w_1x1.reshape(c64, c_in, out_ch).astype(jnp.float32)      # (64, c_in, out_ch)
    weff = jnp.einsum("cio,ok->cik", w3, filt,
                      precision=jax.lax.Precision.HIGHEST)         # (64, c_in, kf)
    # im2col rows are ordered (k outer, in-channel inner).
    weff2d = jnp.transpose(weff, (0, 2, 1)).reshape(c64, kf * c_in)
    weff2d = weff2d.astype(compute_dtype)                          # bf16 MXU feed

    in_bytes = jnp.dtype(compute_dtype).itemsize
    out_bytes = jnp.dtype(out_dtype).itemsize

    # ---- VMEM budget (v7x 64 MiB vs v5e/v6e 128 MiB aware). ----
    try:
        vmem_cap = int(pltpu.get_tpu_info().vmem_capacity_bytes)
    except Exception:
        vmem_cap = 64 * 1024 * 1024                                # v7x-safe fallback
    soft_cap = int(0.75 * vmem_cap)

    def _vmem_need(lt_):
        T_ = pl.cdiv(L_out, lt_)
        L_in_pad_ = T_ * lt_ + kf - 1
        return (2 * c_in * L_in_pad_ * in_bytes      # double-buffered resident input row
                + 2 * c64 * lt_ * out_bytes          # double-buffered output tile
                + c64 * kf * c_in * in_bytes         # folded weight
                + 2 * kf * c_in * lt_ * in_bytes)    # halo slice + im2col slab

    # ---- L tiling: lane-dense output tiles (multiples of 128). ----
    lt = max(128, min(_round_up(l_tile, 128), _round_up(L_out, 128)))
    while lt > 128 and _vmem_need(lt) > soft_cap:
        lt = max(128, _round_up(lt // 2, 128))
    # TODO(synk): if _vmem_need(128) still exceeds soft_cap (very long L), the
    # resident-row design should switch to the manual halo'd DMA noted above.

    T = pl.cdiv(L_out, lt)
    # v7x megacore: keep at least 2 grid steps when there is work to split.
    if N * T < 2 and L_out > 128:
        lt = max(128, _round_up(pl.cdiv(L_out, 2), 128))
        T = pl.cdiv(L_out, lt)

    L_out_pad = T * lt
    L_in_pad = L_out_pad + kf - 1

    need = _vmem_need(lt)
    vmem_limit = int(min(max(need + (8 << 20), 64 << 20), soft_cap))
    vmem_limit = max(vmem_limit, 32 << 20)

    # Single pad: conv's `half` left halo + right padding that also rounds the
    # output up to a lane-dense multiple of 128 (extra columns sliced off below).
    x_pad = jnp.pad(waveforms.astype(compute_dtype),
                    ((0, 0), (0, 0), (half, L_in_pad - L - half)))

    kernel = functools.partial(_sincconv_kernel, kf=kf, l_tile=lt)

    out = pl.pallas_call(
        kernel,
        out_shape=jax.ShapeDtypeStruct((N, c64, L_out_pad), out_dtype),
        grid=(N, T),
        in_specs=[
            # folded weight: one small block, resident for the whole grid
            pl.BlockSpec((c64, kf * c_in), lambda n, t: (0, 0)),
            # full padded row per batch element; index ignores t -> fetched once per n
            pl.BlockSpec((None, c_in, L_in_pad), lambda n, t: (n, 0, 0)),
        ],
        out_specs=pl.BlockSpec((None, c64, lt), lambda n, t: (n, 0, t)),
        compiler_params=pltpu.CompilerParams(
            dimension_semantics=("parallel", "parallel"),
            vmem_limit_bytes=vmem_limit,
        ),
    )(weff2d, x_pad)
    return out[:, :, :L_out]


def reference(waveforms, a_, b_, w_1x1, kernel_size):
    """Pure-JAX replica of the PyTorch forward (for the correctness check)."""
    N, c_in, L = waveforms.shape
    out_ch = a_.shape[0]
    K = kernel_size + 1 if kernel_size % 2 == 0 else kernel_size
    half = K // 2
    time_disc = jnp.linspace(-half, half, K).astype(jnp.float32)
    a2 = a_.reshape(out_ch, 1).astype(jnp.float32)
    b2 = b_.reshape(out_ch, 1).astype(jnp.float32)
    arg = 2.0 * math.pi * a2 * (time_disc[None, :] - b2)
    y_right = jnp.sin(arg) / (arg + 1e-6)
    filt = jnp.concatenate(
        [jnp.flip(y_right, axis=1), jnp.ones((out_ch, 1), jnp.float32), y_right],
        axis=1)                                                    # (out_ch, 2K+1)

    outs = []
    for i in range(c_in):
        outs.append(jax.lax.conv_general_dilated(
            waveforms[:, i:i + 1, :].astype(jnp.float32), filt[:, None, :],
            window_strides=(1,), padding=((half, half),),
            dimension_numbers=("NCH", "OIH", "NCH"),
            precision=jax.lax.Precision.HIGHEST))
    concat = jnp.concatenate(outs, axis=1)                         # (N, c_in*out_ch, L_out)
    w2 = w_1x1.reshape(w_1x1.shape[0], c_in * out_ch).astype(jnp.float32)
    return jnp.einsum("co,nol->ncl", w2, concat,
                      precision=jax.lax.Precision.HIGHEST)


if __name__ == "__main__":
    # Small shapes consistent with the module.
    N, c_in, L = 2, 2, 16
    out_ch, kernel_size = 8, 5        # K=5 (odd), sinc length 11, L_out = 16-5-1 = 10

    key = jax.random.PRNGKey(0)
    k_x, k_w = jax.random.split(key)
    waveforms = jax.random.normal(k_x, (N, c_in, L), dtype=jnp.float32)

    # Deterministic parameter init (matches __init__ shapes).
    a_ = jnp.linspace(1.0, 10.0, out_ch).astype(jnp.float32)       # nn.Parameter a_
    b_ = jnp.linspace(0.0, 10.0, out_ch).astype(jnp.float32)       # nn.Parameter b_
    fan_in = c_in * out_ch
    w_1x1 = (jax.random.normal(k_w, (64, fan_in, 1), dtype=jnp.float32)
             / math.sqrt(fan_in))                                  # conv1x1 weight, no bias

    ref = reference(waveforms, a_, b_, w_1x1, kernel_size)
    K = kernel_size + 1 if kernel_size % 2 == 0 else kernel_size

    # Default (performance) path: bf16 MXU feed + bf16 output store, f32 accumulation.
    res_bf16 = jax.block_until_ready(
        sincconv_multiple_channel(waveforms, a_, b_, w_1x1, kernel_size))
    assert res_bf16.dtype == jnp.bfloat16
    assert res_bf16.shape == (N, 64, L - K - 1)
    np.testing.assert_allclose(np.asarray(res_bf16, dtype=np.float32),
                               np.asarray(ref), rtol=2e-2, atol=2e-2)

    # Exact path: f32 everywhere (same kernel, different dtypes), tight tolerance.
    res_f32 = jax.block_until_ready(
        sincconv_multiple_channel(waveforms, a_, b_, w_1x1, kernel_size,
                                  compute_dtype=jnp.float32,
                                  out_dtype=jnp.float32))
    assert res_f32.shape == (N, 64, L - K - 1)
    np.testing.assert_allclose(np.asarray(res_f32), np.asarray(ref),
                               rtol=1e-3, atol=1e-3)

    print("KERNEL_OK")
</pallas_src>

<mosaic_0001>
module attributes {stable_mosaic.version = 11 : i64} {
  func.func @_sincconv_kernel(%arg0: i32, %arg1: i32, %arg2: memref<64x22xbf16, #tpu.memory_space<vmem>>, %arg3: memref<1x2x138xbf16, #tpu.memory_space<vmem>>, %arg4: memref<1x64x128xbf16, #tpu.memory_space<vmem>>) attributes {dimension_semantics = [#tpu.dimension_semantics<parallel>, #tpu.dimension_semantics<parallel>], iteration_bounds = array<i64: 2, 1>, scalar_prefetch = 0 : i64, scratch_operands = 0 : i64, tpu.core_type = #tpu.core_type<tc>, window_params = [{pipeline_mode = #tpu.pipeline_mode<synchronous>, transform_indices = @transform_0, window_bounds = array<i64: 64, 22>}, {transform_indices = @transform_1, window_bounds = array<i64: 1, 2, 138>}, {transform_indices = @transform_2, window_bounds = array<i64: 1, 64, 128>}]} {
    %c128_i32 = arith.constant 128 : i32
    %0 = arith.muli %arg1, %c128_i32 : i32
    %1 = tpu.assume_multiple %0, 128 : i32
    %c0 = arith.constant 0 : index
    %c0_0 = arith.constant 0 : index
    %2 = arith.index_cast %1 : i32 to index
    %3 = vector.load %arg3[%c0, %c0_0, %2] : memref<1x2x138xbf16, #tpu.memory_space<vmem>>, vector<1x2x138xbf16>
    %4 = vector.shape_cast %3 : vector<1x2x138xbf16> to vector<2x138xbf16>
    %5 = vector.extract_strided_slice %4 {offsets = [0, 0], sizes = [2, 128], strides = [1, 1]} : vector<2x138xbf16> to vector<2x128xbf16>
    %6 = vector.extract_strided_slice %4 {offsets = [0, 1], sizes = [2, 128], strides = [1, 1]} : vector<2x138xbf16> to vector<2x128xbf16>
    %7 = vector.extract_strided_slice %4 {offsets = [0, 2], sizes = [2, 128], strides = [1, 1]} : vector<2x138xbf16> to vector<2x128xbf16>
    %8 = vector.extract_strided_slice %4 {offsets = [0, 3], sizes = [2, 128], strides = [1, 1]} : vector<2x138xbf16> to vector<2x128xbf16>
    %9 = vector.extract_strided_slice %4 {offsets = [0, 4], sizes = [2, 128], strides = [1, 1]} : vector<2x138xbf16> to vector<2x128xbf16>
    %10 = vector.extract_strided_slice %4 {offsets = [0, 5], sizes = [2, 128], strides = [1, 1]} : vector<2x138xbf16> to vector<2x128xbf16>
    %11 = vector.extract_strided_slice %4 {offsets = [0, 6], sizes = [2, 128], strides = [1, 1]} : vector<2x138xbf16> to vector<2x128xbf16>
    %12 = vector.extract_strided_slice %4 {offsets = [0, 7], sizes = [2, 128], strides = [1, 1]} : vector<2x138xbf16> to vector<2x128xbf16>
    %13 = vector.extract_strided_slice %4 {offsets = [0, 8], sizes = [2, 128], strides = [1, 1]} : vector<2x138xbf16> to vector<2x128xbf16>
    %14 = vector.extract_strided_slice %4 {offsets = [0, 9], sizes = [2, 128], strides = [1, 1]} : vector<2x138xbf16> to vector<2x128xbf16>
    %15 = vector.extract_strided_slice %4 {offsets = [0, 10], sizes = [2, 128], strides = [1, 1]} : vector<2x138xbf16> to vector<2x128xbf16>
    %16 = tpu.concatenate %5, %6, %7, %8, %9, %10, %11, %12, %13, %14, %15 in 0 : vector<2x128xbf16>, vector<2x128xbf16>, vector<2x128xbf16>, vector<2x128xbf16>, vector<2x128xbf16>, vector<2x128xbf16>, vector<2x128xbf16>, vector<2x128xbf16>, vector<2x128xbf16>, vector<2x128xbf16>, vector<2x128xbf16> -> vector<22x128xbf16>
    %c0_1 = arith.constant 0 : index
    %c0_2 = arith.constant 0 : index
    %17 = vector.load %arg2[%c0_1, %c0_2] : memref<64x22xbf16, #tpu.memory_space<vmem>>, vector<64x22xbf16>
    %cst = arith.constant dense<0.000000e+00> : vector<64x128xf32>
    %18 = tpu.matmul %17, %16, %cst {dimension_numbers = #tpu.dot_dimension_numbers<[1], [0], [0], [1], [0, 0, 1, 1], [], []>} : vector<64x22xbf16>, vector<22x128xbf16>, vector<64x128xf32> -> vector<64x128xf32>
    %19 = arith.truncf %18 : vector<64x128xf32> to vector<64x128xbf16>
    %c0_3 = arith.constant 0 : index
    %c0_4 = arith.constant 0 : index
    %c0_5 = arith.constant 0 : index
    %20 = vector.load %arg4[%c0_3, %c0_4, %c0_5] : memref<1x64x128xbf16, #tpu.memory_space<vmem>>, vector<1x64x128xbf16>
    %21 = vector.shape_cast %20 : vector<1x64x128xbf16> to vector<64x128xbf16>
    %22 = vector.shape_cast %19 : vector<64x128xbf16> to vector<1x64x128xbf16>
    tpu.vector_store %arg4[%c0_3, %c0_4, %c0_5], %22 {strides = array<i32>} : memref<1x64x128xbf16, #tpu.memory_space<vmem>>, vector<1x64x128xbf16>,
    return
  }
  func.func @transform_0(%arg0: i32, %arg1: i32) -> (i32, i32) {
    %c0_i32 = arith.constant 0 : i32
    %c0_i32_0 = arith.constant 0 : i32
    %c0_i32_1 = arith.constant 0 : i32
    return %c0_i32, %c0_i32_0 : i32, i32
  }
  func.func @transform_1(%arg0: i32, %arg1: i32) -> (i32, i32, i32) {
    %c0_i32 = arith.constant 0 : i32
    %c0_i32_0 = arith.constant 0 : i32
    %c0_i32_1 = arith.constant 0 : i32
    return %arg0, %c0_i32, %c0_i32_0 : i32, i32, i32
  }
  func.func @transform_2(%arg0: i32, %arg1: i32) -> (i32, i32, i32) {
    %c0_i32 = arith.constant 0 : i32
    %c0_i32_0 = arith.constant 0 : i32
    return %arg0, %c0_i32, %arg1 : i32, i32, i32
  }
}

</mosaic_0001>

<bundles_post_ra>
// kernel: tpu_custom_call.1
= control target key start
LH: loop header
LB: loop body
LE: loop exit
PB: predicated region body
PF: predicated region fallthrough
CT: control target
= control target key end

     0   :  { %7 = vsyncpa [#allocation3], 0  ;;  %s962_s0 = inlined_call_operand.vmem [shape: bf16[64,22], index: 0, kind: input, shape index: {}]   ;;  %s963_s1 = inlined_call_operand.vmem [shape: bf16[2,2,138], index: 1, kind: input, shape index: {}]   ;;  %s964_s2 = inlined_call_operand.hbm [shape: bf16[2,64,128], index: 2, kind: output, shape index: {}]  }
   0x1   :  { %9 = vsyncpa [#allocation3 + $0x1], 0  ;;  %s817_s9 = smov 0   ;;  %s819_s10 = smov 0  }
   0x2   :  { %s821_s11 = smov 0   ;;  %s823_s12 = smov 0  }
   0x3   :  { %s825_s13 = smov 0   ;;  %s827_s14 = smov 0  }
   0x4 LB: > { %s551_s15 = sadd.s32 4294967295, %s786_s14   ;;  %s552_s16 = sadd.s32 4294967294, %s786_s14   ;;  %s786_s14 = sphi %s827_s14, %s15_s14   ;;  %s782_s13 = sphi %s825_s13, %s971_s13   ;;  %s778_s12 = sphi %s823_s12, %s970_s12   ;;  %s774_s11 = sphi %s821_s11, %s969_s11   ;;  %s770_s10 = sphi %s819_s10, %s968_s10   ;;  %s766_s9 = sphi %s817_s9, %s967_s9  }
   0x5   : > { %s27_s17 = sadd.s32 1, %s782_s13  ;;  %s83_s18 = sadd.s32 1, %s774_s11 }
   0x6   : > { %p29_p0 = scmp.ge.s32.totalorder %s27_s17, 2  ;;  %p93_p1 = scmp.ne.s32.totalorder %s774_s11, %s770_s10 }
   0x7   : > { %p94_p2 = scmp.eq.s32.totalorder %s551_s15, 1  ;;  %p99_p3 = scmp.ne.s32.totalorder %s770_s10, %s766_s9 }
   0x8   : > { %s973_s17 = smov (%p29_p0, %s27_s17), 0  ;;  %p100_p5 = scmp.eq.s32.totalorder %s552_s16, 1 }
   0x9   : > { %p857_p4 = por %p94_p2, %p93_p1  ;;  %s78_s20 = ssub.s32 %s782_s13, %s973_s17 }
   0xa   : > { %p555_p6 = scmp.ge.s32.totalorder %s786_s14, 1  ;;  %p81_p7 = scmp.eq.s32.totalorder %s78_s20, 0 }
   0xb   : > { %p864_p8 = por %p100_p5, %p99_p3  ;;  %p128_p9 = scmp.lt.s32.totalorder %s786_s14, 3 }
   0xc   : > { %s870_s22 = scalar_select %p81_p7, %s774_s11, %s83_s18  }
   0xd   : > { %p129_p10 = pnand %p555_p6, %p128_p9 }
   0xe   : > { %p149_p11 = scmp.lt.s32.totalorder (!%p129_p10), %s778_s12, 1  ;;  %v164_v0 = vlaneseq (!%p129_p10)  ;;  %v788_v1 = vmov (!%p129_p10), 1966171168   ;;  %s789_s28 = smov (!%p129_p10), 126   ;;  %v704_v26 = vld [vmem:[%s962_s0] sm:$0xff] (!%p129_p10)   ;;  %vm343_vm0 = vcmask (!%p129_p10), 179200  }
   0xf   : > { %132 = sbr.rel (%p129_p10) target bundleno = 422 (0x1a6), region = 28  ;;  %v162_v2 = vunpack.c.l.s4 (!%p129_p10), %v788_v1  ;;  %s790_s29 = smov (!%p129_p10), 127   ;;  %v705_v27 = vld [vmem:[%s962_s0 + $0x10] sm:$0xff] (!%p129_p10)   ;;  %621 = vmatprep.mubr.msk.bf16.mxu0 (!%p129_p10), %vm343_vm0, %v704_v26  ;;  %vm201_vm1 = vcmask (!%p129_p10), 1039360   ;;  %vm287_vm2 = vcmask (!%p129_p10), 1040384   ;;  %vm229_vm3 = vcmask (!%p129_p10), 1022976  }
  0x10   : > { %v165_v3 = vshrl.u32 (!%p129_p10), %v164_v0, 7  ;;  %s791_s30 = smov (!%p129_p10), 124   ;;  %s792_s3 = smov (!%p129_p10), 125   ;;  %625 = vmatprep.mubr.msk.bf16.mxu1 (!%p129_p10), %vm343_vm0, %v705_v27  ;;  %vm215_vm4 = vcmask (!%p129_p10), 1031168   ;;  %vm291_vm5 = vcmask (!%p129_p10), 1041408   ;;  %vm294_vm6 = vcmask (!%p129_p10), 1042432  }
  0x11   : > { %v163_v4 = vunpack.c.0.s8 (!%p129_p10), %v162_v2  ;;  %s793_s4 = smov (!%p129_p10), 123   ;;  %s794_s5 = smov (!%p129_p10), 122   ;;  %vm253_vm7 = vcmask (!%p129_p10), 1006592   ;;  %vm245_vm8 = vcmask (!%p129_p10), 1014784   ;;  %vm260_vm9 = vcmask (!%p129_p10), 998400  }
  0x12   : > { %s795_s6 = smov (!%p129_p10), 121   ;;  %s796_s7 = smov (!%p129_p10), 120   ;;  %vm297_vm10 = vcmask (!%p129_p10), 1043456   ;;  %vm300_vm11 = vcmask (!%p129_p10), 1044480   ;;  %vm303_vm12 = vcmask (!%p129_p10), 1045504   ;;  %vm267_vm13 = vcmask (!%p129_p10), 990208  }
  0x13   : > { %v166_v5 = vsub.s32 (!%p129_p10), %v163_v4, %v165_v3  ;;  %s797_s20 = smov (!%p129_p10), 119   ;;  %vm306_vm14 = vcmask (!%p129_p10), 1046528   ;;  %vm279_vm15 = vcmask (!%p129_p10), 973824   ;;  %v706_v4 = vld [vmem:[%s962_s0 + $0x8] sm:$0xff] (!%p129_p10)   ;;  %s799_s15 = smov (!%p129_p10), [#allocation2]  }
  0x14   : > { %s712_s16 = sshll.u32 (!%p129_p10), %s799_s15, 4  ;;  %s713_s16 = int_to_ptr.vmem [resolvable:$false] %s712_s16 }
  0x15   : > { %s714_s18 = scalar_lea.vmem (!%p129_p10), %s713_s16, 1024 }
  0x16   : > { %s150_s23 = scalar_select %p149_p11, %s778_s12, 1 }
  0x18   : > { %s557_s24 = sshll.u32 %s150_s23, 1  ;;  %s798_s23 = smov 118  }
  0x19   : > { %s152_s27 = scalar_lea.vmem %s963_s1, %s557_s24 }
  0x1a   : > { %v877_v6 = vld [vmem:[%s152_s27] sm:$0x3] }
  0x1b   : > { %v174_v7 = vrot.slane %v877_v6, %v166_v5  ;;  %v160_v8 = vcombine.low %v877_v6, %v877_v6 }
  0x1d   : > { %v189_v9 = vrot.slane %v174_v7, %v166_v5  ;;  %v167_v10 = vrot.slane %v160_v8, %v166_v5  ;;  %v203_v11 = vcombine.low %v174_v7, %v174_v7  ;;  %v231_v14 = vcombine.high %v174_v7, %v174_v7 }
  0x1f   : > { %213 = vrot.lane.b32.xlu1 %v189_v9, %s789_s28  ;;  %v182_v12 = vrot.slane %v167_v10, %v166_v5  ;;  %v210_v13 = vrot.slane %v203_v11, %v166_v5  ;;  %v239_v15 = vcombine.low %v189_v9, %v189_v9  ;;  %v175_v16 = vcombine.high %v167_v10, %v167_v10 }
  0x20   : > { %v238_v17 = vrot.slane %v231_v14, %v166_v5  ;;  %v217_v19 = vcombine.low %v167_v10, %v167_v10 }
  0x21   : > { %197 = vrot.lane.b32.xlu0 %v182_v12, %s790_s29  ;;  %v196_v18 = vrot.slane %v175_v16, %v166_v5  ;;  %v247_v23 = vcombine.low %v182_v12, %v182_v12  ;;  %v255_v24 = vcombine.low %v210_v13, %v210_v13 }
  0x22   : > { %v240_v20 = vcombine.low %v238_v17, %v238_v17  ;;  %v224_v21 = vrot.slane %v217_v19, %v166_v5  ;;  %v707_v5 = vld [vmem:[%s962_s0 + $0x18] sm:$0xff]  }
  0x23   : > { %211 = vrot.lane.b32.xlu1 %v210_v13, %s789_s28  ;;  %v248_v22 = vcombine.low %v196_v18, %v196_v18  ;;  %s146_s28 = sand.u32 1, %s770_s10  }
  0x24   : > { %v262_v25 = vcombine.low %v224_v21, %v224_v21 }
  0x25   : > { %241 = vrot.lane.b32.xlu0 %v239_v15, %s791_s30 }
  0x27   : > { %227 = vrot.lane.b32.xlu1 %v182_v12, %s792_s3 }
  0x29   : > { %199 = vrot.lane.b32.xlu0 %v196_v18, %s790_s29  ;;  %s556_s29 = sshll.u32 %s146_s28, 5 }
  0x2b   : > { %243 = vrot.lane.b32.xlu1 %v240_v20, %s791_s30  ;;  %s148_s30 = scalar_lea.vmem [#allocation2], %s556_s29 }
  0x2d   : > { %225 = vrot.lane.b32.xlu0 %v224_v21, %s792_s3  ;;  %s478_s3 = sshll.u32 %s148_s30, 4  ;;  %s909_s3 = int_to_ptr.vmem [resolvable:$true] %s478_s3 }
  0x2e   : > { %s708_s8 = scalar_lea.vmem %s909_s3, 512  ;;  %p715_p1 = scmp.lt.s32.totalorder %s909_s3, %s713_s16 }
  0x2f   : > { %251 = vrot.lane.b32.xlu1 %v248_v22, %s793_s4  ;;  %p709_p12 = scmp.ne.s32.totalorder %s909_s3, %s708_s8  ;;  %p716_p2 = scmp.lt.s32.totalorder %s714_s18, %s708_s8 }
  0x31   : > { %249 = vrot.lane.b32.xlu0 %v247_v23, %s793_s4  ;;  %s587_s4 = sshll.u32 %s778_s12, 9  ;;  %s916_s12 = scalar_lea.sflag [#allocation3], %s146_s28 }
  0x32   : > { %p710_p13 = pnand %p709_p12, %p857_p4  ;;  %p717_p3 = por %p716_p2, %p715_p1 }
  0x33   : > { %258 = vrot.lane.b32.xlu1 %v239_v15, %s794_s5 }
  0x34   : > { %p711_p0 = pneg %p710_p13 }
  0x35   : > { %256 = vrot.lane.b32.xlu0 %v255_v24, %s794_s5 }
  0x36   : > { %p718_p5 = pnand %p717_p3, %p711_p0 }
  0x37   : > { %265 = vrot.lane.b32.xlu1 %v247_v23, %s795_s6 }
  0x39   : > { %263 = vrot.lane.b32.xlu0 %v262_v25, %s795_s6 }
  0x3b   : > { %271 = vrot.lane.b32.xlu1 %v238_v17, %s796_s7 }
  0x3d   : > { %269 = vrot.lane.b32.xlu0 %v189_v9, %s796_s7  ;;  %s914_s7 = scalar_lea.hbm %s964_s2, %s587_s4 }
  0x3f   : > { %277 = vrot.lane.b32.xlu1 %v196_v18, %s797_s20 }
  0x41   : > { %275 = vrot.lane.b32.xlu0 %v182_v12, %s797_s20 }
  0x43   : > { %283 = vrot.lane.b32.xlu1 %v189_v9, %s798_s23 }
  0x45   : > { %281 = vrot.lane.b32.xlu0 %v210_v13, %s798_s23 }
  0x91   : > { %v214_v28 = vpop.permute.xlu1 %213 }
  0x93   : > { %v198_v29 = vpop.permute.xlu0 %197 }
  0x95   : > { %v212_v30 = vpop.permute.xlu1 %211 }
  0x96   : > { %v216_v41 = vsel %vm215_vm4, %v212_v30, %v214_v28 }
  0x97   : > { %v242_v31 = vpop.permute.xlu0 %241 }
  0x99   : > { %v228_v32 = vpop.permute.xlu1 %227 }
  0x9b   : > { %v200_v33 = vpop.permute.xlu0 %199 }
  0x9c   : > { %v202_v36 = vsel %vm201_vm1, %v198_v29, %v200_v33  ;;  %vm273_vm1 = vcmask 982016  }
  0x9d   : > { %v244_v34 = vpop.permute.xlu1 %243  ;;  %v290_v38 = vsel %vm287_vm2, %v877_v6, %v202_v36 }
  0x9e   : > { %v293_v43 = vsel %vm291_vm5, %v290_v38, %v216_v41  ;;  %v246_v47 = vsel %vm245_vm8, %v242_v31, %v244_v34 }
  0x9f   : > { %v226_v35 = vpop.permute.xlu0 %225 }
  0xa0   : > { %v230_v40 = vsel %vm229_vm3, %v226_v35, %v228_v32  ;;  %vm285_vm3 = vcmask 965632  }
  0xa1   : > { %v252_v37 = vpop.permute.xlu1 %251  ;;  %v296_v44 = vsel %vm294_vm6, %v293_v43, %v230_v40 }
  0xa2   : > { %v299_v50 = vsel %vm297_vm10, %v296_v44, %v246_v47 }
  0xa3   : > { %v250_v39 = vpop.permute.xlu0 %249 }
  0xa4   : > { %v254_v46 = vsel %vm253_vm7, %v250_v39, %v252_v37 }
  0xa5   : > { %v259_v42 = vpop.permute.xlu1 %258  ;;  %v302_v51 = vsel %vm300_vm11, %v299_v50, %v254_v46 }
  0xa7   : > { %v257_v45 = vpop.permute.xlu0 %256 }
  0xa8   : > { %v261_v48 = vsel %vm260_vm9, %v257_v45, %v259_v42 }
  0xa9   : > { %v266_v49 = vpop.permute.xlu1 %265  ;;  %v305_v53 = vsel %vm303_vm12, %v302_v51, %v261_v48 }
  0xab   : > { %v264_v52 = vpop.permute.xlu0 %263 }
  0xac   : > { %v268_v54 = vsel %vm267_vm13, %v264_v52, %v266_v49 }
  0xad   : > { %v308_v55 = vsel %vm306_vm14, %v305_v53, %v268_v54  ;;  %v272_v56 = vpop.permute.xlu1 %271 }
  0xae   : > { %617 = vmatprep.subr.bf16.mxu0 %v308_v55  ;;  %629 = vmatprep.subr.bf16.mxu1 %v308_v55 }
  0xaf   : > { %v270_v57 = vpop.permute.xlu0 %269  ;;  %618 = vmatpush3.bf16.msra.mxu0 %v308_v55  ;;  %631 = vmatpush3.bf16.msra.mxu1 %v308_v55 }
  0xb0   : > { %v274_v62 = vsel %vm273_vm1, %v270_v57, %v272_v56 }
  0xb1   : > { %v278_v58 = vpop.permute.xlu1 %277 }
  0xb3   : > { %v276_v59 = vpop.permute.xlu0 %275 }
  0xb4   : > { %v280_v60 = vsel %vm279_vm15, %v276_v59, %v278_v58 }
  0xb5   : > { %v284_v61 = vpop.permute.xlu1 %283  ;;  %v312_v0 = vsel %vm287_vm2, %v274_v62, %v280_v60 }
  0xb7   : > { %v282_v63 = vpop.permute.xlu0 %281 }
  0xb8   : > { %v286_v1 = vsel %vm285_vm3, %v282_v63, %v284_v61 }
  0xb9   : > { %v314_v2 = vsel %vm291_vm5, %v312_v0, %v286_v1 }
  0xba   : > { %633 = vmatprep.subr.msk.bf16.mxu0 %vm294_vm6, %v314_v2  ;;  %634 = vmatprep.subr.msk.bf16.mxu1 %vm294_vm6, %v314_v2  ;;  %v356_v3 = vsel %vm294_vm6, %v314_v2, 0 }
  0xbb   : > { %620 = vmatpush3.bf16.msra.mxu0 %v356_v3  ;;  %632 = vmatpush3.bf16.msra.mxu1 %v356_v3 }
  0xbe   : > { %622 = vmatmul.mubr.msk.bf16.vlgmr.msra.gmra.mrb[0].mxu0 %vm343_vm0, %v706_v4  ;;  %626 = vmatmul.mubr.msk.bf16.vlgmr.msra.gmra.mrb[0].mxu1 %vm343_vm0, %v707_v5 }
 0x191   : > { %v623_v6 = vpop.f32.mrb[0].mxu0  ;;  %v627_v7 = vpop.f32.mrb[0].mxu1 }
 0x192   : > { %v392_v8 = vpop.f32.mrb[1].mxu0  ;;  %v408_v9 = vpop.f32.mrb[1].mxu1 }
 0x193   : > { %v624_v10 = vpop.f32.mrb[2].mxu0  ;;  %v628_v11 = vpop.f32.mrb[2].mxu1 }
 0x194   : > { %v596_v12 = vpack.c.bf16 %v624_v10, %v623_v6  ;;  %v606_v13 = vpack.c.bf16 %v628_v11, %v627_v7  ;;  %v395_v14 = vpop.f32.mrb[3].mxu0  ;;  %v411_v15 = vpop.f32.mrb[3].mxu1 }
 0x195   : > { %v591_v16 = vpack.c.bf16 %v395_v14, %v392_v8  ;;  %v601_v17 = vpack.c.bf16 %v411_v15, %v408_v9 }
 0x196   : > { %608 = vst [vmem:[%s148_s30 + $0x8] sm:$0xff] %v596_v12   ;;  %610 = vst [vmem:[%s148_s30 + $0x18] sm:$0xff] %v606_v13  }
 0x197   : > { %592 = vst [vmem:[%s148_s30] sm:$0xff] %v591_v16   ;;  %609 = vst [vmem:[%s148_s30 + $0x10] sm:$0xff] %v601_v17  }
 0x198   : > { %721 = shalt.err (!%p718_p5)
}
 0x199   : > { %s722_s20 = scalar_lea.hbm %s914_s7, 512  ;;  %s726_s25 = scalar_lea.hbm %s964_s2, 1024 }
 0x19a   : > { %p723_p6 = scmp.ne.s32.totalorder %s914_s7, %s722_s20  ;;  %p727_p10 = scmp.lt.u32.totalorder %s914_s7, %s964_s2 }
 0x19b   : > { %p728_p11 = scmp.lt.u32.totalorder %s726_s25, %s722_s20  ;;  %p730_p13 = scmp.lt.u32.totalorder %s722_s20, %s914_s7 }
 0x19c   : > { %p724_p7 = pnand %p723_p6, %p857_p4 }
 0x19d   : > { %p729_p12 = por %p728_p11, %p727_p10 }
 0x19e   : > { %p725_p9 = pneg %p724_p7 }
 0x19f   : > { %p731_p0 = por %p730_p13, %p729_p12 }
 0x1a1   : > { %p732_p1 = pnand %p731_p0, %p725_p9 }
 0x1a3   : > { %735 = shalt.err (!%p732_p1)
}
 0x1a4   : > { %s800_s28 = smov 64   ;;  %s801_s29 = smov 4  }
 0x1a5   : > { %635 = dma.vmem_to_hbm [thread:$0]  (%p857_p4), %s909_s3, 512, %s914_s7, %s916_s12, %s800_s28, %s800_s28, %s801_s29  }
 0x1a6 PF: > { %p641_p2 = scmp.ge.s32.totalorder %s786_s14, 2  ;;  %s493_s30 = sand.u32 1, %s766_s9  }
 0x1a7   : > { %s494_s4 = scalar_lea.sflag [#allocation3], %s493_s30 }
 0x1a8   : > { %p638_p3 = pnand %p641_p2, %p864_p8 }
 0x1aa   : > { %761 = dma.done.wait (!%p638_p3), %s494_s4, 512  }
 0x1ab   : > { %763 = vsyncadd (!%p638_p3), %s494_s4, 4294966784  ;;  %s15_s14 = sadd.s32 1, %s786_s14   ;;  %s967_s9 = smov %s770_s10 }
 0x1ac   : > { %p12_p5 = scmp.ge.s32.totalorder %s15_s14, 4   ;;  %s968_s10 = smov %s774_s11 }
 0x1ad   : > { %s969_s11 = smov %s870_s22  ;;  %s970_s12 = smov %s782_s13 }
 0x1ae   : > { %s971_s13 = smov %s973_s17  ;;  %14 = sbr.rel (!%p12_p5) target bundleno = 4 (0x4), region = 64 }
 0x1b5   :  { %499 = vsyncpa [#allocation3], 1 }
 0x1b6   :  { %501 = vsyncpa [#allocation3 + $0x1], 1 }

</bundles_post_ra>
